<compile_context>
chip_gen: v7x
topology: tpu7x:2x2x1
jax: 0.10.0
libtpu: 0.0.40
codegen_flags: <defaults>
</compile_context>

<pallas_src>
import jax
import jax.numpy as jnp
from jax import lax
from jax.experimental import pallas as pl
from jax.experimental.pallas import tpu as pltpu


def _round_up(a, b):
    return -(-a // b) * b


def _largest_div_multiple(n, base, cap):
    """Largest multiple of `base` that divides n and is <= cap, else None."""
    best = None
    t = base
    while t <= min(n, cap):
        if n % t == 0:
            best = t
        t += base
    return best


def _patch_embed_kernel(x_ref, w_ref, b_ref, o_ref):
    # Single-shot (tm, K) x (K, tn) matmul on the MXU, f32 accumulation,
    # bias add + cast fused into the only store.
    acc = jnp.dot(x_ref[...], w_ref[...], preferred_element_type=jnp.float32)
    o_ref[...] = (acc + b_ref[...]).astype(o_ref.dtype)


def _patch_embed_kernel_ksplit(x_ref, w_ref, b_ref, o_ref, acc_ref):
    # Fallback when (tm*K + K*tn) tiles would not fit VMEM: tiled K reduction
    # with the bias folded into the k == 0 initialization.
    k = pl.program_id(2)

    @pl.when(k == 0)
    def _():
        acc_ref[...] = jnp.broadcast_to(b_ref[...], acc_ref.shape)

    acc_ref[...] += jnp.dot(x_ref[...], w_ref[...],
                            preferred_element_type=jnp.float32)

    @pl.when(k == pl.num_programs(2) - 1)
    def _():
        o_ref[...] = acc_ref[...].astype(o_ref.dtype)


def patch_embed3d(x, weight, bias, *, patch_size, flatten=True):
    """x: (B, C, H, W, D) ; weight: (E, C, pH, pW, pD) ; bias: (E,)"""
    B, C, H, W, D = x.shape
    pH, pW, pD = patch_size
    E = weight.shape[0]
    gH, gW, gD = H // pH, W // pW, D // pD
    num_patches = gH * gW * gD

    # --- glue: patch extraction (pure relayout, fused by XLA) -----------------
    # Cast to bf16 first so the relayout writes X to HBM once, in MXU dtype.
    # TODO(synk): with a channels-last (B,H,W,D,C) input upstream, fold the
    # patchify into the kernel via a gather-style index_map / DMA instead of an
    # XLA transpose; gridding the raw (B,C,H,W,D) directly is blocked by the
    # (8,128) BlockSpec constraint since pW/pD < 128.
    xb = x.astype(jnp.bfloat16)
    xp = xb.reshape(B, C, gH, pH, gW, pW, gD, pD)
    xp = xp.transpose(0, 2, 4, 6, 1, 3, 5, 7)            # (B,gH,gW,gD,C,pH,pW,pD)
    xm = xp.reshape(B * num_patches, C * pH * pW * pD)   # (M, K) bf16

    wm = weight.reshape(E, C * pH * pW * pD).T.astype(jnp.bfloat16)  # (K, N)
    bm = bias.reshape(1, E).astype(jnp.float32)                      # (1, N) f32

    M, K = xm.shape
    N = E
    out_dtype = x.dtype
    out_bytes = jnp.dtype(out_dtype).itemsize

    # --- tile selection -------------------------------------------------------
    # tm: largest multiple of 8 dividing M (no pad copy), else full M, else pad.
    tm = _largest_div_multiple(M, 8, 512)
    divides = True
    if tm is None:
        if M <= 512:
            tm = M                      # full-dim block (allowed by exception)
        else:
            tm = 256
            divides = False             # pad fallback (rare)

    # tn: full embed_dim when it is a multiple of 128 -> X read exactly once;
    # else largest 128-multiple divisor; else full N (masked lanes, still correct).
    tn = _largest_div_multiple(N, 128, N)
    if tn is None:
        tn = N

    # tk: keep the whole K in one dot unless VMEM forces a split.
    tk = K
    ksplit = False

    def _vmem_est(tm_, tn_, tk_, ksplit_):
        b = 2 * 2 * (tm_ * tk_ + tk_ * tn_)      # bf16 inputs, double-buffered
        b += 2 * tm_ * tn_ * out_bytes           # output tile, double-buffered
        b += 2 * 4 * tn_                         # bias tile
        if ksplit_:
            b += 4 * tm_ * tn_                   # f32 accumulator scratch
        return b

    BUDGET = 40 * 1024 * 1024                    # headroom under v7x's 64 MiB
    while _vmem_est(tm, tn, tk, ksplit) > BUDGET:
        if tn >= 256 and tn % 256 == 0:
            tn //= 2
        elif tm >= 256 and tm % 16 == 0:
            tm //= 2
        elif not ksplit:
            new_tk = None
            for cand in (512, 256, 128):
                if K % cand == 0 and cand < tk:
                    new_tk = cand
                    break
            if new_tk is None:
                break
            tk = new_tk
            ksplit = True
        else:
            break

    # v7x megacore: keep the parallel grid extent >= 2 when possible.
    m_tiles = -(-M // tm)
    n_tiles = N // tn
    if m_tiles * n_tiles < 2:
        if tm % 16 == 0 and tm > 8:
            tm //= 2
        elif tn % 256 == 0:
            tn //= 2
    m_tiles = -(-M // tm)
    n_tiles = N // tn

    if divides:
        M_pad = M
    else:
        M_pad = _round_up(M, tm)
        xm = jnp.pad(xm, ((0, M_pad - M), (0, 0)))   # bf16 pad, sliced off below
        m_tiles = M_pad // tm

    vmem_bytes = _vmem_est(tm, tn, tk, ksplit)
    vmem_limit = int(min(max(int(1.5 * vmem_bytes), 16 * 1024 * 1024),
                         48 * 1024 * 1024))

    # Advisory cost: X re-read once per N tile, W once per M tile.
    cost = pl.CostEstimate(
        flops=2 * M_pad * K * N,
        bytes_accessed=(2 * M_pad * K * n_tiles + 2 * K * N * m_tiles
                        + M_pad * N * out_bytes + 4 * N),
        transcendentals=0,
    )

    if not ksplit:
        grid = (m_tiles, n_tiles)
        kernel = _patch_embed_kernel
        in_specs = [
            pl.BlockSpec((tm, K), lambda i, j: (i, 0)),
            pl.BlockSpec((K, tn), lambda i, j: (0, j)),
            pl.BlockSpec((1, tn), lambda i, j: (0, j)),
        ]
        out_specs = pl.BlockSpec((tm, tn), lambda i, j: (i, j))
        scratch_shapes = []
        semantics = ("parallel", "parallel")
    else:
        grid = (m_tiles, n_tiles, K // tk)
        kernel = _patch_embed_kernel_ksplit
        in_specs = [
            pl.BlockSpec((tm, tk), lambda i, j, k: (i, k)),
            pl.BlockSpec((tk, tn), lambda i, j, k: (k, j)),
            pl.BlockSpec((1, tn), lambda i, j, k: (0, j)),
        ]
        out_specs = pl.BlockSpec((tm, tn), lambda i, j, k: (i, j))
        scratch_shapes = [pltpu.VMEM((tm, tn), jnp.float32)]
        semantics = ("parallel", "parallel", "arbitrary")

    out = pl.pallas_call(
        kernel,
        out_shape=jax.ShapeDtypeStruct((M_pad, N), out_dtype),
        grid_spec=pltpu.PrefetchScalarGridSpec(
            num_scalar_prefetch=0,
            grid=grid,
            in_specs=in_specs,
            out_specs=out_specs,
            scratch_shapes=scratch_shapes,
        ),
        compiler_params=pltpu.CompilerParams(
            dimension_semantics=semantics,
            vmem_limit_bytes=vmem_limit),
        cost_estimate=cost,
    )(xm, wm, bm)

    out = out[:M].reshape(B, num_patches, E)    # == x.flatten(2).transpose(1, 2)
    if not flatten:
        out = out.reshape(B, gH, gW, gD, E).transpose(0, 4, 1, 2, 3)
    return out


if __name__ == "__main__":
    # Small shapes consistent with the module: img_size=(16,16,16), patch=(8,8,8)
    B, C = 2, 2
    img_size = (16, 16, 16)
    patch_size = (8, 8, 8)
    embed_dim = 128

    key = jax.random.PRNGKey(0)
    kx, kw, kb = jax.random.split(key, 3)
    x = jax.random.normal(kx, (B, C) + img_size, dtype=jnp.float32)
    weight = jax.random.normal(kw, (embed_dim, C) + patch_size, dtype=jnp.float32) * 0.02
    bias = jax.random.normal(kb, (embed_dim,), dtype=jnp.float32) * 0.02

    out = patch_embed3d(x, weight, bias, patch_size=patch_size, flatten=True)
    out = jax.block_until_ready(out)

    # Reference: Conv3d(kernel=stride=patch) on bf16-rounded inputs (kernel feeds
    # the MXU bf16 operands, f32 accumulation), then flatten(2).transpose(1, 2).
    x_bf = x.astype(jnp.bfloat16).astype(jnp.float32)
    w_bf = weight.astype(jnp.bfloat16).astype(jnp.float32)
    ref = lax.conv_general_dilated(
        x_bf, w_bf, window_strides=patch_size, padding="VALID",
        dimension_numbers=("NCHWD", "OIHWD", "NCHWD"),
        precision=lax.Precision.HIGHEST)
    ref = ref + bias.reshape(1, embed_dim, 1, 1, 1)
    ref = ref.reshape(B, embed_dim, -1).transpose(0, 2, 1)

    assert out.shape == (B, (16 // 8) ** 3, embed_dim)
    assert jnp.allclose(out, ref, atol=2e-3, rtol=2e-3)
    print("KERNEL_OK")
</pallas_src>

<mosaic_0001>
module attributes {stable_mosaic.version = 11 : i64} {
  func.func @_patch_embed_kernel(%arg0: i32, %arg1: i32, %arg2: memref<8x1024xbf16, #tpu.memory_space<vmem>>, %arg3: memref<1024x128xbf16, #tpu.memory_space<vmem>>, %arg4: memref<1x128xf32, #tpu.memory_space<vmem>>, %arg5: memref<8x128xf32, #tpu.memory_space<vmem>>) attributes {dimension_semantics = [#tpu.dimension_semantics<parallel>, #tpu.dimension_semantics<parallel>], iteration_bounds = array<i64: 2, 1>, scalar_prefetch = 0 : i64, scratch_operands = 0 : i64, tpu.core_type = #tpu.core_type<tc>, window_params = [{transform_indices = @transform_0, window_bounds = array<i64: 8, 1024>}, {transform_indices = @transform_1, window_bounds = array<i64: 1024, 128>}, {transform_indices = @transform_2, window_bounds = array<i64: 1, 128>}, {transform_indices = @transform_3, window_bounds = array<i64: 8, 128>}]} {
    %c0 = arith.constant 0 : index
    %c0_0 = arith.constant 0 : index
    %0 = vector.load %arg2[%c0, %c0_0] : memref<8x1024xbf16, #tpu.memory_space<vmem>>, vector<8x1024xbf16>
    %c0_1 = arith.constant 0 : index
    %c0_2 = arith.constant 0 : index
    %1 = vector.load %arg3[%c0_1, %c0_2] : memref<1024x128xbf16, #tpu.memory_space<vmem>>, vector<1024x128xbf16>
    %cst = arith.constant dense<0.000000e+00> : vector<8x128xf32>
    %2 = tpu.matmul %0, %1, %cst {dimension_numbers = #tpu.dot_dimension_numbers<[1], [0], [0], [1], [0, 0, 1, 1], [], []>} : vector<8x1024xbf16>, vector<1024x128xbf16>, vector<8x128xf32> -> vector<8x128xf32>
    %c0_3 = arith.constant 0 : index
    %c0_4 = arith.constant 0 : index
    %3 = vector.load %arg4[%c0_3, %c0_4] : memref<1x128xf32, #tpu.memory_space<vmem>>, vector<1x128xf32>
    %4 = vector.broadcast %3 : vector<1x128xf32> to vector<8x128xf32>
    %5 = arith.addf %2, %4 : vector<8x128xf32>
    %c0_5 = arith.constant 0 : index
    %c0_6 = arith.constant 0 : index
    %6 = vector.load %arg5[%c0_5, %c0_6] : memref<8x128xf32, #tpu.memory_space<vmem>>, vector<8x128xf32>
    tpu.vector_store %arg5[%c0_5, %c0_6], %5 {strides = array<i32>} : memref<8x128xf32, #tpu.memory_space<vmem>>, vector<8x128xf32>,
    return
  }
  func.func @transform_0(%arg0: i32, %arg1: i32) -> (i32, i32) {
    %c0_i32 = arith.constant 0 : i32
    %c0_i32_0 = arith.constant 0 : i32
    return %arg0, %c0_i32 : i32, i32
  }
  func.func @transform_1(%arg0: i32, %arg1: i32) -> (i32, i32) {
    %c0_i32 = arith.constant 0 : i32
    %c0_i32_0 = arith.constant 0 : i32
    return %c0_i32, %arg1 : i32, i32
  }
  func.func @transform_2(%arg0: i32, %arg1: i32) -> (i32, i32) {
    %c0_i32 = arith.constant 0 : i32
    %c0_i32_0 = arith.constant 0 : i32
    return %c0_i32, %arg1 : i32, i32
  }
  func.func @transform_3(%arg0: i32, %arg1: i32) -> (i32, i32) {
    %c0_i32 = arith.constant 0 : i32
    return %arg0, %arg1 : i32, i32
  }
}

</mosaic_0001>

<bundles_post_ra>
// kernel: tpu_custom_call.1
= control target key start
LH: loop header
LB: loop body
LE: loop exit
PB: predicated region body
PF: predicated region fallthrough
CT: control target
= control target key end

     0   :  { %8 = vsyncpa [#allocation3], 0  ;;  %s1789_s0 = inlined_call_operand.hbm [shape: bf16[16,1024], index: 0, kind: input, shape index: {}]   ;;  %s1790_s1 = inlined_call_operand.hbm [shape: bf16[1024,128], index: 1, kind: input, shape index: {}]   ;;  %s1791_s2 = inlined_call_operand.vmem [shape: f32[1,128], index: 2, kind: input, shape index: {}]   ;;  %s1792_s3 = inlined_call_operand.hbm [shape: f32[16,128], index: 3, kind: output, shape index: {}]  }
   0x1   :  { %10 = vsyncpa [#allocation3 + $0x1], 0 }
   0x2   :  { %11 = vsyncpa [#allocation6], 0 }
   0x3   :  { %12 = vsyncpa [#allocation4], 0 }
   0x4   :  { %14 = vsyncpa [#allocation4 + $0x1], 0  ;;  %s1565_s12 = smov 0   ;;  %s1567_s13 = smov 0  }
   0x5   :  { %s1569_s14 = smov 0   ;;  %s1571_s15 = smov 0  }
   0x6   :  { %s1573_s16 = smov 0   ;;  %s1575_s17 = smov 0  }
   0x7 LB: > { %s1068_s18 = sadd.s32 4294967295, %s1538_s17   ;;  %s1069_s19 = sadd.s32 4294967294, %s1538_s17   ;;  %s1538_s17 = sphi %s1575_s17, %s20_s17   ;;  %s1534_s16 = sphi %s1573_s16, %s1816_s16   ;;  %s1530_s15 = sphi %s1571_s15, %s1815_s15   ;;  %s1526_s14 = sphi %s1569_s14, %s1814_s14   ;;  %s1522_s13 = sphi %s1567_s13, %s1813_s13   ;;  %s1518_s12 = sphi %s1565_s12, %s1812_s12  }
   0x8   : > { %p52_p0 = scmp.ne.s32.totalorder %s1522_s13, %s1518_s12  ;;  %p1599_p1 = scmp.eq.s32.totalorder %s1068_s18, 0 }
   0x9   : > { %p1603_p2 = scmp.eq.s32.totalorder %s1068_s18, 1  ;;  %p136_p3 = scmp.eq.s32.totalorder %s1069_s19, 1 }
   0xa   : > { %s1797_s20 = scalar_select %p1599_p1, 1, 0 }
   0xb   : > { %s1798_s21 = scalar_select %p1603_p2, 1, 0 }
   0xc   : > { %p1609_p4 = por %p1599_p1, %p52_p0  ;;  %p1070_p5 = scmp.ge.s32.totalorder %s1538_s17, 1 }
   0xd   : > { %p1614_p6 = por %p136_p3, %p52_p0  ;;  %p143_p7 = scmp.lt.s32.totalorder %s1538_s17, 3 }
   0xe   : > { %s1799_s22 = scalar_select %p1609_p4, 1, 0 }
   0xf   : > { %s1800_s23 = scalar_select %p1614_p6, 1, 0 }
  0x10   : > { %p1619_p8 = pnand %p1070_p5, %p143_p7  ;;  %s1540_s25 = smov [#allocation5]  }
  0x11   : > { %s157_s26 = sshll.u32 %s1540_s25, 4  ;;  %s32_s28 = sadd.s32 1, %s1534_s16  ;;  %s158_s26 = int_to_ptr.vmem [resolvable:$true] %s157_s26 }
  0x12   : > { %s1801_s24 = scalar_select %p1619_p8, 1, 0 }
  0x13   : > { %p1255_p9 = pneg %p1619_p8  ;;  %s1394_s4 = scalar_lea.hbm %s1790_s1, 8192 }
  0x14   : > { %p1395_p12 = scmp.ne.s32.totalorder %s1790_s1, %s1394_s4  ;;  %p1401_p5 = scmp.lt.u32.totalorder %s1394_s4, %s1790_s1 }
  0x15   : > { %p1628_p11 = pnand %p1255_p9, %p1599_p1 }
  0x17   : > { %p1396_p13 = pneg %p1628_p11 }
  0x19   : > { %p1397_p0 = pnand %p1396_p13, %p1395_p12 }
  0x1b   : > { %p1398_p3 = pneg %p1397_p0 }
  0x1d   : > { %p1403_p7 = pnand %p1401_p5, %p1398_p3 }
  0x1f   : > { %1406 = shalt.err (!%p1403_p7)
}
  0x20   : > { %s1407_s9 = scalar_lea.vmem %s158_s26, 8192  ;;  %p1415_p1 = scmp.lt.s32.totalorder %s158_s26, %s158_s26 }
  0x21   : > { %p1408_p9 = scmp.ne.s32.totalorder %s158_s26, %s1407_s9  ;;  %p1416_p4 = scmp.lt.s32.totalorder %s1407_s9, %s1407_s9 }
  0x23   : > { %p1410_p10 = pnand %p1408_p9, %p1396_p13  ;;  %p1417_p8 = por %p1416_p4, %p1415_p1 }
  0x25   : > { %p1411_p6 = pneg %p1410_p10 }
  0x27   : > { %p1418_p2 = pnand %p1417_p8, %p1411_p6 }
  0x29   : > { %1421 = shalt.err (!%p1418_p2)
}
  0x2a   : > { %s1541_s10 = smov 64   ;;  %s1542_s11 = smov 4  }
  0x2b   : > { %1258 = dma.hbm_to_vmem [thread:$0]  (!%p1628_p11), %s1790_s1, 8192, %s158_s26, [#allocation6], %s1541_s10, %s1541_s10, %s1542_s11  }
  0x2c   : > { %p34_p1 = scmp.ge.s32.totalorder %s32_s28, 2  ;;  %s39_s25 = sadd.s32 1, %s1526_s14 }
  0x2d   : > { %p46_p2 = scmp.ne.s32.totalorder %s1526_s14, %s1522_s13  ;;  %p47_p4 = scmp.eq.s32.totalorder %s1538_s17, 0 }
  0x2e   : > { %s1818_s28 = smov (%p34_p1, %s32_s28), 0  ;;  %p1804_p8 = scmp.ne.s32.totalorder %s1798_s21, 0 }
  0x2f   : > { %p1655_p6 = por %p47_p4, %p46_p2  ;;  %s36_s27 = ssub.s32 %s1534_s16, %s1818_s28 }
  0x30   : > { %p1661_p10 = por %p1804_p8, %p46_p2  ;;  %p1268_p12 = scmp.lt.s32.totalorder %s1538_s17, 2 }
  0x31   : > { %p37_p11 = scmp.eq.s32.totalorder %s36_s27, 0  ;;  %s177_s26 = sand.u32 1, %s1526_s14  }
  0x32   : > { %s1074_s4 = sshll.u32 %s177_s26, 5  ;;  %s1158_s6 = sshll.u32 %s1534_s16, 9 }
  0x33   : > { %s1670_s5 = scalar_select %p37_p11, %s1526_s14, %s39_s25  }
  0x34   : > { %s1676_s9 = scalar_lea.hbm %s1789_s0, %s1158_s6  ;;  %s181_s21 = scalar_lea.vmem [#allocation2], %s1074_s4 }
  0x35   : > { %s189_s10 = sshll.u32 %s181_s21, 4  ;;  %p1682_p13 = pnand %p1268_p12, %p1655_p6  ;;  %s1678_s10 = int_to_ptr.vmem [resolvable:$true] %s189_s10 }
  0x36   : > { %s178_s18 = scalar_lea.sflag [#allocation3], %s177_s26  ;;  %s1422_s19 = scalar_lea.hbm %s1676_s9, 512 }
  0x37   : > { %p1423_p0 = scmp.ne.s32.totalorder %s1676_s9, %s1422_s19  ;;  %p1424_p3 = pneg %p1682_p13 }
  0x38   : > { %s1427_s4 = scalar_lea.hbm %s1789_s0, 1024  ;;  %p1428_p9 = scmp.lt.u32.totalorder %s1676_s9, %s1789_s0 }
  0x39   : > { %p1425_p5 = pnand %p1424_p3, %p1423_p0  ;;  %p1429_p1 = scmp.lt.u32.totalorder %s1427_s4, %s1422_s19 }
  0x3a   : > { %p1431_p4 = scmp.lt.u32.totalorder %s1422_s19, %s1676_s9 }
  0x3b   : > { %p1426_p7 = pneg %p1425_p5  ;;  %p1430_p2 = por %p1429_p1, %p1428_p9 }
  0x3d   : > { %p1432_p6 = por %p1431_p4, %p1430_p2 }
  0x3f   : > { %p1433_p8 = pnand %p1432_p6, %p1426_p7 }
  0x41   : > { %1436 = shalt.err (!%p1433_p8)
}
  0x42   : > { %s1437_s26 = scalar_lea.vmem %s1678_s10, 512  ;;  %s1543_s7 = smov [#allocation2]  }
  0x43   : > { %p1438_p12 = scmp.ne.s32.totalorder %s1678_s10, %s1437_s26  ;;  %s1442_s8 = sshll.u32 %s1543_s7, 4  ;;  %s1443_s8 = int_to_ptr.vmem [resolvable:$false] %s1442_s8 }
  0x44   : > { %s1444_s21 = scalar_lea.vmem %s1443_s8, 1024  ;;  %p1445_p5 = scmp.lt.s32.totalorder %s1678_s10, %s1443_s8 }
  0x45   : > { %p1440_p11 = pnand %p1438_p12, %p1424_p3  ;;  %p1446_p9 = scmp.lt.s32.totalorder %s1444_s21, %s1437_s26 }
  0x47   : > { %p1441_p0 = pneg %p1440_p11  ;;  %p1447_p1 = por %p1446_p9, %p1445_p5 }
  0x49   : > { %p1448_p2 = pnand %p1447_p1, %p1441_p0 }
  0x4b   : > { %1451 = shalt.err (!%p1448_p2)
}
  0x4c   : > { %1262 = dma.hbm_to_vmem [thread:$0]  (!%p1682_p13), %s1676_s9, 512, %s1678_s10, %s178_s18  }
  0x4d   : > { %p1807_p7 = scmp.ne.s32.totalorder %s1801_s24, 0 }
  0x4e   : > { %s1714_s19 = sand.u32 (!%p1807_p7), 1, %s1522_s13   ;;  %p1808_p3 = scmp.ne.s32.totalorder (!%p1807_p7), %s1799_s22, 0 }
  0x4f   : > { %198 = sbr.rel (%p1807_p7) target bundleno = 389 (0x185), region = 32  ;;  %s1078_s25 = sshll.u32 (!%p1807_p7), %s1714_s19, 5 }
  0x50   : > { %s201_s27 = scalar_lea.sflag (!%p1807_p7), [#allocation3], %s1714_s19  ;;  %s1718_s4 = scalar_lea.vmem (!%p1807_p7), [#allocation2], %s1078_s25 }
  0x56   : > { %1505 = dma.done.wait (%p1808_p3), %s201_s27, 512  }
  0x57   : > { %1507 = vsyncadd (%p1808_p3), %s201_s27, 4294966784  ;;  %p1809_p13 = scmp.ne.s32.totalorder %s1797_s20, 0 }
  0x59   : > { %1509 = dma.done.wait (%p1809_p13), [#allocation6], 8192  }
  0x5a   : > { %1511 = vsyncadd (%p1809_p13), [#allocation6], 4294959104  ;;  %v1322_v0 = vld [vmem:[#allocation5 + $0x40] sm:$0xff]   ;;  %v1326_v4 = vld [vmem:[#allocation5 + $0x48] sm:$0xff]   ;;  %s1080_s24 = sshll.u32 %s1714_s19, 3  ;;  %s1155_s9 = sshll.u32 %s1530_s15, 7 }
  0x5b   : > { %v1323_v1 = vld [vmem:[#allocation5 + $0xc0] sm:$0xff]   ;;  %1159 = vmatprep.subr.bf16.mxu0 %v1322_v0  ;;  %v1327_v5 = vld [vmem:[#allocation5 + $0xc8] sm:$0xff]   ;;  %v1330_v8 = vld [vmem:[#allocation5 + $0x50] sm:$0xff]   ;;  %s233_s10 = scalar_lea.vmem [#allocation7], %s1080_s24  ;;  %s1740_s6 = scalar_lea.hbm %s1792_s3, %s1155_s9 }
  0x5c   : > { %v1324_v2 = vld [vmem:[#allocation5] sm:$0xff]   ;;  %1181 = vmatprep.subr.bf16.mxu1 %v1323_v1  ;;  %v1328_v6 = vld [vmem:[#allocation5 + $0x8] sm:$0xff]   ;;  %v1331_v9 = vld [vmem:[#allocation5 + $0xd0] sm:$0xff]   ;;  %s965_s11 = sshll.u32 %s233_s10, 4  ;;  %s951_s26 = scalar_lea.sflag [#allocation4], %s1714_s19  ;;  %s1742_s11 = int_to_ptr.vmem [resolvable:$true] %s965_s11 }
  0x5d   : > { %v1325_v3 = vld [vmem:[#allocation5 + $0x80] sm:$0xff]   ;;  %1160 = vmatpush3.bf16.msra.mxu0 %v1324_v2  ;;  %v1329_v7 = vld [vmem:[#allocation5 + $0x88] sm:$0xff]   ;;  %v1332_v10 = vld [vmem:[#allocation5 + $0x10] sm:$0xff]   ;;  %s1452_s7 = scalar_lea.vmem %s1742_s11, 128  ;;  %s1544_s15 = smov [#allocation7]  }
  0x5e   : > { %1182 = vmatpush3.bf16.msra.mxu1 %v1325_v3  ;;  %1161 = vmatprep.subr.bf16.mxu0 %v1326_v4  ;;  %v1333_v11 = vld [vmem:[#allocation5 + $0x90] sm:$0xff]   ;;  %v1334_v12 = vld [vmem:[#allocation5 + $0x58] sm:$0xff]   ;;  %v1338_v16 = vld [vmem:[#allocation5 + $0x60] sm:$0xff]   ;;  %p1453_p4 = scmp.ne.s32.totalorder %s1742_s11, %s1452_s7  ;;  %s1456_s8 = sshll.u32 %s1544_s15, 4  ;;  %s1457_s8 = int_to_ptr.vmem [resolvable:$false] %s1456_s8 }
  0x5f   : > { %1183 = vmatprep.subr.bf16.mxu1 %v1327_v5  ;;  %v1335_v13 = vld [vmem:[#allocation5 + $0xd8] sm:$0xff]   ;;  %v1339_v17 = vld [vmem:[#allocation5 + $0xe0] sm:$0xff]   ;;  %v1342_v20 = vld [vmem:[#allocation5 + $0x68] sm:$0xff]   ;;  %s1458_s21 = scalar_lea.vmem %s1457_s8, 256  ;;  %p1459_p12 = scmp.lt.s32.totalorder %s1742_s11, %s1457_s8 }
  0x60   : > { %v1336_v14 = vld [vmem:[#allocation5 + $0x18] sm:$0xff]   ;;  %v1340_v18 = vld [vmem:[#allocation5 + $0x20] sm:$0xff]   ;;  %v1343_v21 = vld [vmem:[#allocation5 + $0xe8] sm:$0xff]   ;;  %p1454_p6 = pnand %p1453_p4, %p1661_p10  ;;  %p1460_p11 = scmp.lt.s32.totalorder %s1458_s21, %s1452_s7 }
  0x61   : > { %1162 = vmatpush3.bf16.msra.mxu0 %v1328_v6  ;;  %v1337_v15 = vld [vmem:[#allocation5 + $0x98] sm:$0xff]   ;;  %v1341_v19 = vld [vmem:[#allocation5 + $0xa0] sm:$0xff]   ;;  %v1344_v22 = vld [vmem:[#allocation5 + $0x28] sm:$0xff]  }
  0x62   : > { %1184 = vmatpush3.bf16.msra.mxu1 %v1329_v7  ;;  %1163 = vmatprep.subr.bf16.mxu0 %v1330_v8  ;;  %v1345_v23 = vld [vmem:[#allocation5 + $0xa8] sm:$0xff]   ;;  %v1346_v24 = vld [vmem:[#allocation5 + $0x70] sm:$0xff]   ;;  %v1350_v28 = vld [vmem:[#allocation5 + $0x78] sm:$0xff]   ;;  %p1455_p8 = pneg %p1454_p6  ;;  %p1461_p0 = por %p1460_p11, %p1459_p12 }
  0x63   : > { %1185 = vmatprep.subr.bf16.mxu1 %v1331_v9  ;;  %v1347_v25 = vld [vmem:[#allocation5 + $0xf0] sm:$0xff]   ;;  %v1351_v29 = vld [vmem:[#allocation5 + $0xf8] sm:$0xff]   ;;  %v238_v32 = vld [vmem:[%s1718_s4] sm:$0xff] }
  0x64   : > { %v1348_v26 = vld [vmem:[#allocation5 + $0x30] sm:$0xff]   ;;  %v1352_v30 = vld [vmem:[#allocation5 + $0x38] sm:$0xff]   ;;  %v239_v33 = vld [vmem:[%s1718_s4 + $0x8] sm:$0xff]  ;;  %v1082_v34 = vcombine.low %v238_v32, %v238_v32  ;;  %v1083_v35 = vcombine.high %v238_v32, %v238_v32  ;;  %p1462_p5 = pnand %p1461_p0, %p1455_p8 }
  0x65   : > { %1164 = vmatpush3.bf16.msra.mxu0 %v1332_v10  ;;  %v1349_v27 = vld [vmem:[#allocation5 + $0xb0] sm:$0xff]   ;;  %v1353_v31 = vld [vmem:[#allocation5 + $0xb8] sm:$0xff]   ;;  %v1084_v36 = vcombine.low %v239_v33, %v239_v33  ;;  %v1085_v37 = vcombine.high %v239_v33, %v239_v33  ;;  %v1358_v38 = vld [vmem:[#allocation5 + $0x140] sm:$0xff]  }
  0x66   : > { %1186 = vmatpush3.bf16.msra.mxu1 %v1333_v11  ;;  %1165 = vmatprep.subr.bf16.mxu0 %v1334_v12  ;;  %v1359_v39 = vld [vmem:[#allocation5 + $0x1c0] sm:$0xff]   ;;  %v1362_v42 = vld [vmem:[#allocation5 + $0x148] sm:$0xff]   ;;  %v1366_v46 = vld [vmem:[#allocation5 + $0x150] sm:$0xff]  }
  0x67   : > { %1187 = vmatprep.subr.bf16.mxu1 %v1335_v13  ;;  %821 = vmatprep.mubr.bf16.mxu0 %v1083_v35  ;;  %v1360_v40 = vld [vmem:[#allocation5 + $0x100] sm:$0xff]   ;;  %v1363_v43 = vld [vmem:[#allocation5 + $0x1c8] sm:$0xff]   ;;  %v1367_v47 = vld [vmem:[#allocation5 + $0x1d0] sm:$0xff]  }
  0x68   : > { %861 = vmatprep.mubr.bf16.mxu1 %v1085_v37  ;;  %v1361_v41 = vld [vmem:[#allocation5 + $0x180] sm:$0xff]   ;;  %v1364_v44 = vld [vmem:[#allocation5 + $0x108] sm:$0xff]   ;;  %v1368_v48 = vld [vmem:[#allocation5 + $0x110] sm:$0xff]  }
  0x69   : > { %1166 = vmatpush3.bf16.msra.mxu0 %v1336_v14  ;;  %v1365_v45 = vld [vmem:[#allocation5 + $0x188] sm:$0xff]   ;;  %v1369_v49 = vld [vmem:[#allocation5 + $0x190] sm:$0xff]   ;;  %v1370_v50 = vld [vmem:[#allocation5 + $0x158] sm:$0xff]  }
  0x6a   : > { %1188 = vmatpush3.bf16.msra.mxu1 %v1337_v15  ;;  %1167 = vmatprep.subr.bf16.mxu0 %v1338_v16  ;;  %v1371_v51 = vld [vmem:[#allocation5 + $0x1d8] sm:$0xff]   ;;  %v1374_v54 = vld [vmem:[#allocation5 + $0x160] sm:$0xff]   ;;  %v1378_v58 = vld [vmem:[#allocation5 + $0x168] sm:$0xff]  }
  0x6b   : > { %1189 = vmatprep.subr.bf16.mxu1 %v1339_v17  ;;  %v1372_v52 = vld [vmem:[#allocation5 + $0x118] sm:$0xff]   ;;  %v1375_v55 = vld [vmem:[#allocation5 + $0x1e0] sm:$0xff]   ;;  %v1379_v59 = vld [vmem:[#allocation5 + $0x1e8] sm:$0xff]  }
  0x6c   : > { %v1373_v53 = vld [vmem:[#allocation5 + $0x198] sm:$0xff]   ;;  %v1376_v56 = vld [vmem:[#allocation5 + $0x120] sm:$0xff]   ;;  %v1380_v60 = vld [vmem:[#allocation5 + $0x128] sm:$0xff]  }
  0x6d   : > { %1168 = vmatpush3.bf16.msra.mxu0 %v1340_v18  ;;  %v1377_v57 = vld [vmem:[#allocation5 + $0x1a0] sm:$0xff]   ;;  %v1381_v61 = vld [vmem:[#allocation5 + $0x1a8] sm:$0xff]   ;;  %v1382_v62 = vld [vmem:[#allocation5 + $0x170] sm:$0xff]  }
  0x6e   : > { %1190 = vmatpush3.bf16.msra.mxu1 %v1341_v19  ;;  %1169 = vmatprep.subr.bf16.mxu0 %v1342_v20  ;;  %v1383_v63 = vld [vmem:[#allocation5 + $0x1f0] sm:$0xff]   ;;  %v1386_v2 = vld [vmem:[#allocation5 + $0x178] sm:$0xff]   ;;  %v1081_v14 = vld [vmem:[%s1791_s2] ss:$0 sm:$0xff] }
  0x6f   : > { %1191 = vmatprep.subr.bf16.mxu1 %v1343_v21  ;;  %v1384_v0 = vld [vmem:[#allocation5 + $0x130] sm:$0xff]   ;;  %v1387_v3 = vld [vmem:[#allocation5 + $0x1f8] sm:$0xff]  }
  0x70   : > { %v1385_v1 = vld [vmem:[#allocation5 + $0x1b0] sm:$0xff]   ;;  %v1388_v4 = vld [vmem:[#allocation5 + $0x138] sm:$0xff]  }
  0x71   : > { %1170 = vmatpush3.bf16.msra.mxu0 %v1344_v22  ;;  %v1389_v5 = vld [vmem:[#allocation5 + $0x1b8] sm:$0xff]   ;;  %v240_v6 = vld [vmem:[%s1718_s4 + $0x10] sm:$0xff] }
  0x72   : > { %1192 = vmatpush3.bf16.msra.mxu1 %v1345_v23  ;;  %1171 = vmatprep.subr.bf16.mxu0 %v1346_v24  ;;  %v1086_v7 = vcombine.low %v240_v6, %v240_v6  ;;  %v1087_v8 = vcombine.high %v240_v6, %v240_v6  ;;  %v241_v9 = vld [vmem:[%s1718_s4 + $0x18] sm:$0xff] }
  0x73   : > { %1193 = vmatprep.subr.bf16.mxu1 %v1347_v25  ;;  %v1088_v10 = vcombine.low %v241_v9, %v241_v9  ;;  %v1089_v11 = vcombine.high %v241_v9, %v241_v9 }
  0x75   : > { %1172 = vmatpush3.bf16.msra.mxu0 %v1348_v26 }
  0x76   : > { %1194 = vmatpush3.bf16.msra.mxu1 %v1349_v27  ;;  %1173 = vmatprep.subr.bf16.mxu0 %v1350_v28 }
  0x77   : > { %1195 = vmatprep.subr.bf16.mxu1 %v1351_v29 }
  0x79   : > { %1174 = vmatpush3.bf16.msra.mxu0 %v1352_v30 }
  0x7a   : > { %1196 = vmatpush3.bf16.msra.mxu1 %v1353_v31  ;;  %1203 = vmatprep.subr.bf16.mxu0 %v1358_v38 }
  0x7b   : > { %1225 = vmatprep.subr.bf16.mxu1 %v1359_v39 }
  0x7c   : > { %822 = vmatmul.mubr.bf16.vlgmr.msra.gmra.mrb[0].mxu0 %v1082_v34 }
  0x7d   : > { %862 = vmatmul.mubr.bf16.vlgmr.msra.gmra.mrb[0].mxu1 %v1084_v36  ;;  %1204 = vmatpush3.bf16.msra.mxu0 %v1360_v40 }
  0x7e   : > { %1226 = vmatpush3.bf16.msra.mxu1 %v1361_v41  ;;  %1205 = vmatprep.subr.bf16.mxu0 %v1362_v42 }
  0x7f   : > { %1227 = vmatprep.subr.bf16.mxu1 %v1363_v43  ;;  %901 = vmatprep.mubr.bf16.mxu0 %v1087_v8 }
  0x80   : > { %941 = vmatprep.mubr.bf16.mxu1 %v1089_v11 }
  0x81   : > { %1206 = vmatpush3.bf16.msra.mxu0 %v1364_v44 }
  0x82   : > { %1228 = vmatpush3.bf16.msra.mxu1 %v1365_v45  ;;  %1207 = vmatprep.subr.bf16.mxu0 %v1366_v46 }
  0x83   : > { %1229 = vmatprep.subr.bf16.mxu1 %v1367_v47 }
  0x85   : > { %1208 = vmatpush3.bf16.msra.mxu0 %v1368_v48 }
  0x86   : > { %1230 = vmatpush3.bf16.msra.mxu1 %v1369_v49  ;;  %1209 = vmatprep.subr.bf16.mxu0 %v1370_v50 }
  0x87   : > { %1231 = vmatprep.subr.bf16.mxu1 %v1371_v51 }
  0x89   : > { %1210 = vmatpush3.bf16.msra.mxu0 %v1372_v52 }
  0x8a   : > { %1232 = vmatpush3.bf16.msra.mxu1 %v1373_v53  ;;  %1211 = vmatprep.subr.bf16.mxu0 %v1374_v54 }
  0x8b   : > { %1233 = vmatprep.subr.bf16.mxu1 %v1375_v55 }
  0x8d   : > { %1212 = vmatpush3.bf16.msra.mxu0 %v1376_v56 }
  0x8e   : > { %1234 = vmatpush3.bf16.msra.mxu1 %v1377_v57  ;;  %1213 = vmatprep.subr.bf16.mxu0 %v1378_v58 }
  0x8f   : > { %1235 = vmatprep.subr.bf16.mxu1 %v1379_v59 }
  0x91   : > { %1214 = vmatpush3.bf16.msra.mxu0 %v1380_v60 }
  0x92   : > { %1236 = vmatpush3.bf16.msra.mxu1 %v1381_v61  ;;  %1215 = vmatprep.subr.bf16.mxu0 %v1382_v62 }
  0x93   : > { %1237 = vmatprep.subr.bf16.mxu1 %v1383_v63 }
  0x95   : > { %1216 = vmatpush3.bf16.msra.mxu0 %v1384_v0 }
  0x96   : > { %1238 = vmatpush3.bf16.msra.mxu1 %v1385_v1  ;;  %1217 = vmatprep.subr.bf16.mxu0 %v1386_v2 }
  0x97   : > { %1239 = vmatprep.subr.bf16.mxu1 %v1387_v3 }
  0x99   : > { %1218 = vmatpush3.bf16.msra.mxu0 %v1388_v4 }
  0x9a   : > { %1240 = vmatpush3.bf16.msra.mxu1 %v1389_v5 }
  0x9c   : > { %902 = vmatmul.mubr.bf16.vlgmr.msra.gmra.mrb[4].mxu0 %v1086_v7 }
  0x9d   : > { %942 = vmatmul.mubr.bf16.vlgmr.msra.gmra.mrb[4].mxu1 %v1088_v10 }
 0x14f   : > { %v1175_v12 = vpop.f32.mrb[0].mxu0 }
 0x150   : > { %v1197_v13 = vpop.f32.mrb[0].mxu1  ;;  %v1176_v15 = vpop.f32.mrb[1].mxu0 }
 0x151   : > { %v1198_v16 = vpop.f32.mrb[1].mxu1  ;;  %v1177_v17 = vadd.f32 %v1176_v15, %v1175_v12  ;;  %v1178_v19 = vpop.f32.mrb[2].mxu0 }
 0x152   : > { %v1199_v18 = vadd.f32 %v1198_v16, %v1197_v13  ;;  %v1200_v20 = vpop.f32.mrb[2].mxu1  ;;  %v1179_v21 = vpop.f32.mrb[3].mxu0 }
 0x153   : > { %v1201_v22 = vpop.f32.mrb[3].mxu1  ;;  %v824_v23 = vadd.f32 %v1177_v17, %v1081_v14 }
 0x155   : > { %v864_v24 = vadd.f32 %v1199_v18, %v824_v23 }
 0x16f   : > { %v1219_v25 = vpop.f32.mrb[4].mxu0 }
 0x170   : > { %v1241_v26 = vpop.f32.mrb[4].mxu1  ;;  %v1220_v27 = vpop.f32.mrb[5].mxu0 }
 0x171   : > { %v1242_v28 = vpop.f32.mrb[5].mxu1  ;;  %v1221_v29 = vadd.f32 %v1220_v27, %v1219_v25  ;;  %v1222_v31 = vpop.f32.mrb[6].mxu0 }
 0x172   : > { %v1243_v30 = vadd.f32 %v1242_v28, %v1241_v26  ;;  %v1244_v32 = vpop.f32.mrb[6].mxu1  ;;  %v1223_v33 = vpop.f32.mrb[7].mxu0 }
 0x173   : > { %v1245_v34 = vpop.f32.mrb[7].mxu1  ;;  %v904_v35 = vadd.f32 %v1221_v29, %v864_v24 }
 0x175   : > { %v944_v36 = vadd.f32 %v1243_v30, %v904_v35 }
 0x177   : > { %949 = vst [vmem:[%s233_s10] sm:$0xff] %v944_v36 }
 0x178   : > { %1465 = shalt.err (!%p1462_p5)
}
 0x179   : > { %s1466_s19 = scalar_lea.hbm %s1740_s6, 128  ;;  %s1470_s4 = scalar_lea.hbm %s1792_s3, 256 }
 0x17a   : > { %p1467_p9 = scmp.ne.s32.totalorder %s1740_s6, %s1466_s19  ;;  %p1471_p7 = scmp.lt.u32.totalorder %s1740_s6, %s1792_s3 }
 0x17b   : > { %p1472_p3 = scmp.lt.u32.totalorder %s1470_s4, %s1466_s19  ;;  %p1474_p4 = scmp.lt.u32.totalorder %s1466_s19, %s1740_s6 }
 0x17c   : > { %p1468_p1 = pnand %p1467_p9, %p1661_p10 }
 0x17d   : > { %p1473_p13 = por %p1472_p3, %p1471_p7 }
 0x17e   : > { %p1469_p2 = pneg %p1468_p1 }
 0x17f   : > { %p1475_p6 = por %p1474_p4, %p1473_p13 }
 0x181   : > { %p1476_p8 = pnand %p1475_p6, %p1469_p2 }
 0x183   : > { %1479 = shalt.err (!%p1476_p8)
}
 0x184   : > { %1253 = dma.vmem_to_hbm [thread:$0]  (%p1661_p10), %s1742_s11, 128, %s1740_s6, %s951_s26  }
 0x185 PF: > { %s977_s24 = sand.u32 1, %s1518_s12   ;;  %p1810_p12 = scmp.ne.s32.totalorder %s1800_s23, 0 }
 0x186   : > { %p1811_p11 = scmp.ge.s32.totalorder %s1538_s17, 2  ;;  %s978_s9 = scalar_lea.sflag [#allocation4], %s977_s24 }
 0x188   : > { %p1264_p0 = pnand %p1811_p11, %p1810_p12 }
 0x18a   : > { %1513 = dma.done.wait (!%p1264_p0), %s978_s9, 128  }
 0x18b   : > { %1515 = vsyncadd (!%p1264_p0), %s978_s9, 4294967168  ;;  %s20_s17 = sadd.s32 1, %s1538_s17   ;;  %s1812_s12 = smov %s1522_s13 }
 0x18c   : > { %p17_p5 = scmp.ge.s32.totalorder %s20_s17, 4   ;;  %s1813_s13 = smov %s1526_s14 }
 0x18d   : > { %s1814_s14 = smov %s1670_s5  ;;  %s1815_s15 = smov %s1534_s16 }
 0x18e   : > { %s1816_s16 = smov %s1818_s28  ;;  %19 = sbr.rel (!%p17_p5) target bundleno = 7 (0x7), region = 85 }
 0x195   :  { %983 = vsyncpa [#allocation3], 1 }
 0x196   :  { %985 = vsyncpa [#allocation3 + $0x1], 1 }
 0x197   :  { %986 = vsyncpa [#allocation6], 1 }
 0x198   :  { %987 = vsyncpa [#allocation4], 1 }
 0x199   :  { %989 = vsyncpa [#allocation4 + $0x1], 1 }

</bundles_post_ra>
